<compile_context>
chip_gen: v5e
topology: v5e:2x2
jax: 0.10.0
libtpu: 0.0.40
codegen_flags: <defaults>
</compile_context>

<pallas_src>
import math

import jax
import jax.numpy as jnp
from jax.experimental import pallas as pl
from jax.experimental.pallas import tpu as pltpu


# --------------------------------------------------------------------------
# kernel
# --------------------------------------------------------------------------
def _make_kernel(need_mask, tk_tile, tk_real, acc_in_out):
    """need_mask/tk_tile/tk_real handle Tk padding; acc_in_out accumulates
    directly into the resident output block (f32 outputs only)."""

    def kernel(q_ref, k_ref, v_ref, o_ref, m_sc, l_sc, *maybe_acc):
        acc_ref = o_ref if acc_in_out else maybe_acc[0]
        kv = pl.program_id(2)

        # init accumulators at the first kv tile of each (batch-block, q-tile)
        @pl.when(kv == 0)
        def _():
            m_sc[...] = jnp.full_like(m_sc, -jnp.inf)
            l_sc[...] = jnp.zeros_like(l_sc)
            acc_ref[...] = jnp.zeros_like(acc_ref)

        # fold 1/sqrt(d_k) into Q (Tq*d_k elements, not Tq*Tk scores); a
        # Python float keeps the input dtype (bf16 stays bf16).
        scale = 1.0 / math.sqrt(q_ref.shape[-1])
        q = q_ref[...] * scale          # (bb, tq, d_k)
        k = k_ref[...]                  # (bb, tk, d_k)
        v = v_ref[...]                  # (bb, tk, d_v)

        # scores = Q K^T : contraction over d_k, operands in input dtype,
        # f32 accumulation on the MXU.
        s = jnp.einsum("bqd,bkd->bqk", q, k,
                       preferred_element_type=jnp.float32)     # (bb, tq, tk)

        if need_mask:
            # mask padded K columns (only the last kv tile actually has any)
            col = kv * tk_tile + jax.lax.broadcasted_iota(jnp.int32, s.shape, 2)
            s = jnp.where(col < tk_real, s, -jnp.inf)

        # online softmax (numerically stable; exact once all kv tiles seen)
        m_prev = m_sc[...]
        m_new = jnp.maximum(m_prev, jnp.max(s, axis=-1, keepdims=True))
        alpha = jnp.exp(m_prev - m_new)
        p = jnp.exp(s - m_new)
        l_sc[...] = alpha * l_sc[...] + jnp.sum(p, axis=-1, keepdims=True)
        pv = jnp.einsum("bqk,bkv->bqv", p.astype(v.dtype), v,
                        preferred_element_type=jnp.float32)    # (bb, tq, d_v)
        acc_ref[...] = (alpha * acc_ref[...].astype(jnp.float32) + pv
                        ).astype(acc_ref.dtype)
        m_sc[...] = m_new

        # finalize: normalize once per (batch-block, q-tile)
        @pl.when(kv == pl.num_programs(2) - 1)
        def _():
            inv_l = pl.reciprocal(l_sc[...], approx=False)   # off hot loop
            o_ref[...] = (acc_ref[...].astype(jnp.float32) * inv_l
                          ).astype(o_ref.dtype)

    return kernel


# --------------------------------------------------------------------------
# tiling helpers
# --------------------------------------------------------------------------
def _round_up(x, m):
    return ((x + m - 1) // m) * m


def _chip_vmem_bytes():
    try:
        return int(pltpu.get_tpu_info().vmem_capacity_bytes)
    except Exception:
        return 64 << 20   # conservative (v7x-sized) fallback


def _pick_seq_tile(t, max_tile):
    """Tile for a sequence axis.  Full extent when it fits a single tile,
    otherwise the largest MXU-friendly tile with modest padding waste."""
    if t <= max_tile:
        return t
    cands = [c for c in (512, 384, 256, 128) if c <= max_tile]
    for c in cands:
        if _round_up(t, c) - t <= c // 2:
            return c
    return min(cands, key=lambda c: (_round_up(t, c), -c))


def _pick_batch_block(b, tq, tk, d_k, d_v, itemsize, acc_in_out,
                      budget_bytes, q_blocks):
    """Fold batch elements only when tiles are tiny; keep the parallel grid
    extent >= 2 (v7x has 2 TensorCores sharded over the parallel axes)."""
    if tq * tk >= 128 * 128:
        return 1
    per = (2 * itemsize * (tq * d_k + tk * d_k + tk * d_v)   # q/k/v double-buffered
           + 2 * itemsize * tq * d_v                          # output double-buffered
           + (0 if acc_in_out else 4 * tq * d_v)              # f32 acc scratch
           + 4 * 2 * tq                                       # m, l scratch
           + 4 * 2 * tq * tk)                                 # s / p f32 intermediates
    bb = max(1, min(b, budget_bytes // max(per, 1)))
    while b % bb:
        bb -= 1
    while bb > 1 and (b // bb) * q_blocks < 2:
        bb -= 1
        while b % bb:
            bb -= 1
    return bb


# --------------------------------------------------------------------------
# wrapper
# --------------------------------------------------------------------------
def scaled_dot_product_attention(query, key, value):
    """query: (B, Tq, d_k), key: (B, Tk, d_k), value: (B, Tk, d_v)."""
    B, Tq, d_k = query.shape
    Bk, Tk, d_kk = key.shape
    Bv, Tkv, d_v = value.shape
    assert (Bk, Bv, Tkv, d_kk) == (B, B, Tk, d_k)

    out_dtype = query.dtype
    acc_in_out = jnp.dtype(out_dtype) == jnp.dtype(jnp.float32)
    itemsize = jnp.dtype(query.dtype).itemsize

    # chip-aware budgets
    vmem_cap = _chip_vmem_bytes()
    if vmem_cap >= (96 << 20):              # v5e / v6e: 128 MiB physical VMEM
        max_tile, vmem_limit, kv_buffers = 512, 64 << 20, 3
    else:                                   # v7x: 64 MiB per TensorCore
        max_tile = 256
        vmem_limit = min(48 << 20, (vmem_cap * 3) // 4)
        kv_buffers = 2

    tq = _pick_seq_tile(Tq, max_tile)
    tk = _pick_seq_tile(Tk, max_tile)
    Tq_pad = _round_up(Tq, tq)
    Tk_pad = _round_up(Tk, tk)

    bb = _pick_batch_block(B, tq, tk, d_k, d_v, itemsize, acc_in_out,
                           budget_bytes=vmem_limit // 2,
                           q_blocks=Tq_pad // tq)

    # pad non-divisible sequence lengths (Q rows are sliced off afterwards;
    # padded K columns are -inf masked inside the kernel)
    q_in, k_in, v_in = query, key, value
    if Tq_pad != Tq:
        q_in = jnp.pad(query, ((0, 0), (0, Tq_pad - Tq), (0, 0)))
    if Tk_pad != Tk:
        k_in = jnp.pad(key, ((0, 0), (0, Tk_pad - Tk), (0, 0)))
        v_in = jnp.pad(value, ((0, 0), (0, Tk_pad - Tk), (0, 0)))

    kv_steps = Tk_pad // tk
    grid = (B // bb, Tq_pad // tq, kv_steps)

    # deepen the K/V pipeline only where VMEM is plentiful and the kv loop is
    # long enough to benefit
    kv_kwargs = {}
    if kv_buffers > 2 and kv_steps >= kv_buffers:
        kv_kwargs["pipeline_mode"] = pl.Buffered(kv_buffers)

    in_specs = [
        pl.BlockSpec((bb, tq, d_k), lambda b, qi, ki: (b, qi, 0)),
        pl.BlockSpec((bb, tk, d_k), lambda b, qi, ki: (b, ki, 0), **kv_kwargs),
        pl.BlockSpec((bb, tk, d_v), lambda b, qi, ki: (b, ki, 0), **kv_kwargs),
    ]
    # same output block across the kv axis -> resident accumulator
    out_spec = pl.BlockSpec((bb, tq, d_v), lambda b, qi, ki: (b, qi, 0))

    scratch = [pltpu.VMEM((bb, tq, 1), jnp.float32),    # running max m
               pltpu.VMEM((bb, tq, 1), jnp.float32)]    # running denom l
    if not acc_in_out:                                   # bf16 output path
        scratch.append(pltpu.VMEM((bb, tq, d_v), jnp.float32))

    kernel = _make_kernel(Tk_pad != Tk, tk, Tk, acc_in_out)

    out = pl.pallas_call(
        kernel,
        out_shape=jax.ShapeDtypeStruct((B, Tq_pad, d_v), out_dtype),
        grid_spec=pltpu.PrefetchScalarGridSpec(
            num_scalar_prefetch=0,
            grid=grid,
            in_specs=in_specs,
            out_specs=out_spec,
            scratch_shapes=scratch),
        compiler_params=pltpu.CompilerParams(
            dimension_semantics=("parallel", "parallel", "arbitrary"),
            vmem_limit_bytes=vmem_limit),
    )(q_in, k_in, v_in)

    if Tq_pad != Tq:
        out = out[:, :Tq, :]
    return out


# --------------------------------------------------------------------------
# reference + tests
# --------------------------------------------------------------------------
def _reference(query, key, value):
    q = query.astype(jnp.float32)
    k = key.astype(jnp.float32)
    v = value.astype(jnp.float32)
    d_k = key.shape[-1]
    scores = jnp.einsum("bqd,bkd->bqk", q, k) / jnp.sqrt(jnp.float32(d_k))
    p = jax.nn.softmax(scores, axis=-1)
    return jnp.einsum("bqk,bkv->bqv", p, v)


if __name__ == "__main__":
    key0 = jax.random.PRNGKey(0)

    # 1) small shapes consistent with the module's (B, T, d_k) forward
    B, Tq, Tk, d_k, d_v = 2, 8, 8, 32, 32
    kq, kk, kv = jax.random.split(key0, 3)
    query = jax.random.normal(kq, (B, Tq, d_k), dtype=jnp.float32)
    key_ = jax.random.normal(kk, (B, Tk, d_k), dtype=jnp.float32)
    value = jax.random.normal(kv, (B, Tk, d_v), dtype=jnp.float32)

    out = jax.block_until_ready(scaled_dot_product_attention(query, key_, value))
    assert out.shape == (B, Tq, d_v)
    ref = _reference(query, key_, value)
    assert jnp.allclose(out, ref, atol=2e-2, rtol=2e-2), \
        float(jnp.max(jnp.abs(out - ref)))

    # 2) non-divisible sequence lengths -> padding + K-column masking +
    #    multi-tile online softmax along the kv axis
    B2, Tq2, Tk2, d2 = 2, 200, 1000, 64
    kq2, kk2, kv2 = jax.random.split(jax.random.PRNGKey(1), 3)
    q2 = jax.random.normal(kq2, (B2, Tq2, d2), dtype=jnp.float32)
    k2 = jax.random.normal(kk2, (B2, Tk2, d2), dtype=jnp.float32)
    v2 = jax.random.normal(kv2, (B2, Tk2, d2), dtype=jnp.float32)
    out2 = jax.block_until_ready(scaled_dot_product_attention(q2, k2, v2))
    ref2 = _reference(q2, k2, v2)
    assert out2.shape == (B2, Tq2, d2)
    assert jnp.allclose(out2, ref2, atol=2e-2, rtol=2e-2), \
        float(jnp.max(jnp.abs(out2 - ref2)))

    # 3) bf16 path (separate f32 accumulator scratch)
    B3, Tq3, Tk3, d3 = 2, 256, 384, 64
    kq3, kk3, kv3 = jax.random.split(jax.random.PRNGKey(2), 3)
    q3 = jax.random.normal(kq3, (B3, Tq3, d3), dtype=jnp.bfloat16)
    k3 = jax.random.normal(kk3, (B3, Tk3, d3), dtype=jnp.bfloat16)
    v3 = jax.random.normal(kv3, (B3, Tk3, d3), dtype=jnp.bfloat16)
    out3 = jax.block_until_ready(scaled_dot_product_attention(q3, k3, v3))
    ref3 = _reference(q3, k3, v3)
    assert out3.shape == (B3, Tq3, d3)
    assert jnp.allclose(out3.astype(jnp.float32), ref3, atol=8e-2, rtol=8e-2), \
        float(jnp.max(jnp.abs(out3.astype(jnp.float32) - ref3)))

    print("KERNEL_OK")
</pallas_src>

<mosaic_0001>
module attributes {stable_mosaic.version = 11 : i64} {
  func.func @kernel(%arg0: i32, %arg1: i32, %arg2: i32, %arg3: memref<1x8x32xf32, #tpu.memory_space<vmem>>, %arg4: memref<1x8x32xf32, #tpu.memory_space<vmem>>, %arg5: memref<1x8x32xf32, #tpu.memory_space<vmem>>, %arg6: memref<1x8x32xf32, #tpu.memory_space<vmem>>, %arg7: memref<1x8x1xf32, #tpu.memory_space<vmem>>, %arg8: memref<1x8x1xf32, #tpu.memory_space<vmem>>) attributes {dimension_semantics = [#tpu.dimension_semantics<parallel>, #tpu.dimension_semantics<parallel>, #tpu.dimension_semantics<arbitrary>], iteration_bounds = array<i64: 2, 1, 1>, scalar_prefetch = 0 : i64, scratch_operands = 2 : i64, tpu.core_type = #tpu.core_type<tc>, window_params = [{transform_indices = @transform_0, window_bounds = array<i64: 1, 8, 32>}, {transform_indices = @transform_1, window_bounds = array<i64: 1, 8, 32>}, {transform_indices = @transform_2, window_bounds = array<i64: 1, 8, 32>}, {transform_indices = @transform_3, window_bounds = array<i64: 1, 8, 32>}]} {
    %c0_i32 = arith.constant 0 : i32
    %0 = arith.cmpi eq, %arg2, %c0_i32 : i32
    %1 = arith.extui %0 : i1 to i32
    %c0_i32_0 = arith.constant 0 : i32
    %2 = arith.cmpi ne, %1, %c0_i32_0 : i32
    scf.if %2 {
      %cst_33 = arith.constant 0xFF800000 : f32
      %34 = vector.broadcast %cst_33 : f32 to vector<1x8x1xf32>
      %c0_34 = arith.constant 0 : index
      %c0_35 = arith.constant 0 : index
      %c0_36 = arith.constant 0 : index
      %35 = vector.load %arg7[%c0_34, %c0_35, %c0_36] : memref<1x8x1xf32, #tpu.memory_space<vmem>>, vector<1x8x1xf32>
      tpu.vector_store %arg7[%c0_34, %c0_35, %c0_36], %34 {strides = array<i32>} : memref<1x8x1xf32, #tpu.memory_space<vmem>>, vector<1x8x1xf32>,
      %cst_37 = arith.constant 0.000000e+00 : f32
      %36 = vector.broadcast %cst_37 : f32 to vector<1x8x1xf32>
      %c0_38 = arith.constant 0 : index
      %c0_39 = arith.constant 0 : index
      %c0_40 = arith.constant 0 : index
      %37 = vector.load %arg8[%c0_38, %c0_39, %c0_40] : memref<1x8x1xf32, #tpu.memory_space<vmem>>, vector<1x8x1xf32>
      tpu.vector_store %arg8[%c0_38, %c0_39, %c0_40], %36 {strides = array<i32>} : memref<1x8x1xf32, #tpu.memory_space<vmem>>, vector<1x8x1xf32>,
      %cst_41 = arith.constant 0.000000e+00 : f32
      %38 = vector.broadcast %cst_41 : f32 to vector<1x8x32xf32>
      %c0_42 = arith.constant 0 : index
      %c0_43 = arith.constant 0 : index
      %c0_44 = arith.constant 0 : index
      %39 = vector.load %arg6[%c0_42, %c0_43, %c0_44] : memref<1x8x32xf32, #tpu.memory_space<vmem>>, vector<1x8x32xf32>
      tpu.vector_store %arg6[%c0_42, %c0_43, %c0_44], %38 {strides = array<i32>} : memref<1x8x32xf32, #tpu.memory_space<vmem>>, vector<1x8x32xf32>,
    } else {
    }
    %c0 = arith.constant 0 : index
    %c0_1 = arith.constant 0 : index
    %c0_2 = arith.constant 0 : index
    %3 = vector.load %arg3[%c0, %c0_1, %c0_2] : memref<1x8x32xf32, #tpu.memory_space<vmem>>, vector<1x8x32xf32>
    %cst = arith.constant 0.176776692 : f32
    %4 = vector.broadcast %cst : f32 to vector<1x8x32xf32>
    %5 = arith.mulf %3, %4 : vector<1x8x32xf32>
    %c0_3 = arith.constant 0 : index
    %c0_4 = arith.constant 0 : index
    %c0_5 = arith.constant 0 : index
    %6 = vector.load %arg4[%c0_3, %c0_4, %c0_5] : memref<1x8x32xf32, #tpu.memory_space<vmem>>, vector<1x8x32xf32>
    %c0_6 = arith.constant 0 : index
    %c0_7 = arith.constant 0 : index
    %c0_8 = arith.constant 0 : index
    %7 = vector.load %arg5[%c0_6, %c0_7, %c0_8] : memref<1x8x32xf32, #tpu.memory_space<vmem>>, vector<1x8x32xf32>
    "tpu.trace_start"() <{level = 10 : i32, message = "bqd,bkd->bqk"}> : () -> ()
    %cst_9 = arith.constant dense<0.000000e+00> : vector<1x8x8xf32>
    %8 = tpu.matmul %5, %6, %cst_9 {dimension_numbers = #tpu.dot_dimension_numbers<[2], [2], [1], [1], [0, 0, 0, 1, 1, 1], [0], [0]>} : vector<1x8x32xf32>, vector<1x8x32xf32>, vector<1x8x8xf32> -> vector<1x8x8xf32>
    "tpu.trace_stop"() : () -> ()
    %c0_10 = arith.constant 0 : index
    %c0_11 = arith.constant 0 : index
    %c0_12 = arith.constant 0 : index
    %9 = vector.load %arg7[%c0_10, %c0_11, %c0_12] : memref<1x8x1xf32, #tpu.memory_space<vmem>>, vector<1x8x1xf32>
    %cst_13 = arith.constant dense<0xFF800000> : vector<1x8xf32>
    %10 = vector.multi_reduction <maximumf>, %8, %cst_13 [2] : vector<1x8x8xf32> to vector<1x8xf32>
    %11 = vector.shape_cast %10 : vector<1x8xf32> to vector<1x8x1xf32>
    %12 = arith.maximumf %9, %11 : vector<1x8x1xf32>
    %13 = arith.subf %9, %12 : vector<1x8x1xf32>
    %14 = math.exp %13 : vector<1x8x1xf32>
    %15 = vector.broadcast %12 : vector<1x8x1xf32> to vector<1x8x8xf32>
    %16 = arith.subf %8, %15 : vector<1x8x8xf32>
    %17 = math.exp %16 : vector<1x8x8xf32>
    %c0_14 = arith.constant 0 : index
    %c0_15 = arith.constant 0 : index
    %c0_16 = arith.constant 0 : index
    %18 = vector.load %arg8[%c0_14, %c0_15, %c0_16] : memref<1x8x1xf32, #tpu.memory_space<vmem>>, vector<1x8x1xf32>
    %19 = arith.mulf %14, %18 : vector<1x8x1xf32>
    %cst_17 = arith.constant dense<0.000000e+00> : vector<1x8xf32>
    %20 = vector.multi_reduction <add>, %17, %cst_17 [2] : vector<1x8x8xf32> to vector<1x8xf32>
    %21 = vector.shape_cast %20 : vector<1x8xf32> to vector<1x8x1xf32>
    %22 = arith.addf %19, %21 : vector<1x8x1xf32>
    %c0_18 = arith.constant 0 : index
    %c0_19 = arith.constant 0 : index
    %c0_20 = arith.constant 0 : index
    %23 = vector.load %arg8[%c0_18, %c0_19, %c0_20] : memref<1x8x1xf32, #tpu.memory_space<vmem>>, vector<1x8x1xf32>
    tpu.vector_store %arg8[%c0_18, %c0_19, %c0_20], %22 {strides = array<i32>} : memref<1x8x1xf32, #tpu.memory_space<vmem>>, vector<1x8x1xf32>,
    "tpu.trace_start"() <{level = 10 : i32, message = "bqk,bkv->bqv"}> : () -> ()
    %cst_21 = arith.constant dense<0.000000e+00> : vector<1x8x32xf32>
    %24 = tpu.matmul %17, %7, %cst_21 {dimension_numbers = #tpu.dot_dimension_numbers<[2], [1], [1], [2], [0, 0, 0, 1, 1, 2], [0], [0]>} : vector<1x8x8xf32>, vector<1x8x32xf32>, vector<1x8x32xf32> -> vector<1x8x32xf32>
    "tpu.trace_stop"() : () -> ()
    %c0_22 = arith.constant 0 : index
    %c0_23 = arith.constant 0 : index
    %c0_24 = arith.constant 0 : index
    %25 = vector.load %arg6[%c0_22, %c0_23, %c0_24] : memref<1x8x32xf32, #tpu.memory_space<vmem>>, vector<1x8x32xf32>
    %26 = vector.broadcast %14 : vector<1x8x1xf32> to vector<1x8x32xf32>
    %27 = arith.mulf %26, %25 : vector<1x8x32xf32>
    %28 = arith.addf %27, %24 : vector<1x8x32xf32>
    %c0_25 = arith.constant 0 : index
    %c0_26 = arith.constant 0 : index
    %c0_27 = arith.constant 0 : index
    %29 = vector.load %arg6[%c0_25, %c0_26, %c0_27] : memref<1x8x32xf32, #tpu.memory_space<vmem>>, vector<1x8x32xf32>
    tpu.vector_store %arg6[%c0_25, %c0_26, %c0_27], %28 {strides = array<i32>} : memref<1x8x32xf32, #tpu.memory_space<vmem>>, vector<1x8x32xf32>,
    %c0_28 = arith.constant 0 : index
    %c0_29 = arith.constant 0 : index
    %c0_30 = arith.constant 0 : index
    %30 = vector.load %arg7[%c0_28, %c0_29, %c0_30] : memref<1x8x1xf32, #tpu.memory_space<vmem>>, vector<1x8x1xf32>
    tpu.vector_store %arg7[%c0_28, %c0_29, %c0_30], %12 {strides = array<i32>} : memref<1x8x1xf32, #tpu.memory_space<vmem>>, vector<1x8x1xf32>,
    %c0_i32_31 = arith.constant 0 : i32
    %31 = arith.cmpi eq, %arg2, %c0_i32_31 : i32
    %32 = arith.extui %31 : i1 to i32
    %c0_i32_32 = arith.constant 0 : i32
    %33 = arith.cmpi ne, %32, %c0_i32_32 : i32
    scf.if %33 {
      %c0_33 = arith.constant 0 : index
      %c0_34 = arith.constant 0 : index
      %c0_35 = arith.constant 0 : index
      %34 = vector.load %arg8[%c0_33, %c0_34, %c0_35] : memref<1x8x1xf32, #tpu.memory_space<vmem>>, vector<1x8x1xf32>
      %35 = tpu.reciprocal %34 : vector<1x8x1xf32> -> vector<1x8x1xf32>
      %c0_36 = arith.constant 0 : index
      %c0_37 = arith.constant 0 : index
      %c0_38 = arith.constant 0 : index
      %36 = vector.load %arg6[%c0_36, %c0_37, %c0_38] : memref<1x8x32xf32, #tpu.memory_space<vmem>>, vector<1x8x32xf32>
      %37 = vector.broadcast %35 : vector<1x8x1xf32> to vector<1x8x32xf32>
      %38 = arith.mulf %36, %37 : vector<1x8x32xf32>
      %c0_39 = arith.constant 0 : index
      %c0_40 = arith.constant 0 : index
      %c0_41 = arith.constant 0 : index
      %39 = vector.load %arg6[%c0_39, %c0_40, %c0_41] : memref<1x8x32xf32, #tpu.memory_space<vmem>>, vector<1x8x32xf32>
      tpu.vector_store %arg6[%c0_39, %c0_40, %c0_41], %38 {strides = array<i32>} : memref<1x8x32xf32, #tpu.memory_space<vmem>>, vector<1x8x32xf32>,
    } else {
    }
    return
  }
  func.func @transform_0(%arg0: i32, %arg1: i32, %arg2: i32) -> (i32, i32, i32) {
    %c0_i32 = arith.constant 0 : i32
    %c0_i32_0 = arith.constant 0 : i32
    return %arg0, %arg1, %c0_i32 : i32, i32, i32
  }
  func.func @transform_1(%arg0: i32, %arg1: i32, %arg2: i32) -> (i32, i32, i32) {
    %c0_i32 = arith.constant 0 : i32
    %c0_i32_0 = arith.constant 0 : i32
    return %arg0, %arg2, %c0_i32 : i32, i32, i32
  }
  func.func @transform_2(%arg0: i32, %arg1: i32, %arg2: i32) -> (i32, i32, i32) {
    %c0_i32 = arith.constant 0 : i32
    %c0_i32_0 = arith.constant 0 : i32
    return %arg0, %arg2, %c0_i32 : i32, i32, i32
  }
  func.func @transform_3(%arg0: i32, %arg1: i32, %arg2: i32) -> (i32, i32, i32) {
    %c0_i32 = arith.constant 0 : i32
    %c0_i32_0 = arith.constant 0 : i32
    return %arg0, %arg1, %c0_i32 : i32, i32, i32
  }
}

</mosaic_0001>

<bundles_post_ra>
// kernel: tpu_custom_call.1
= control target key start
LH: loop header
LB: loop body
LE: loop exit
PB: predicated region body
PF: predicated region fallthrough
CT: control target
= control target key end

     0   :  { %s1047_s0 = inlined_call_operand.hbm [shape: f32[2,8,32], index: 0, kind: input, shape index: {}]   ;;  %s1048_s1 = inlined_call_operand.hbm [shape: f32[2,8,32], index: 1, kind: input, shape index: {}]   ;;  %s1049_s2 = inlined_call_operand.hbm [shape: f32[2,8,32], index: 2, kind: input, shape index: {}]   ;;  %s1050_s3 = inlined_call_operand.hbm [shape: f32[2,8,32], index: 3, kind: output, shape index: {}]  }
   0x1   :  { %1053 = sst [smem:[#allocation17_spill]] %s1048_s1 }
   0x2   :  { %8 = vsyncpa [#allocation5], 0 }
   0x3   :  { %10 = vsyncpa [#allocation5 + $0x1], 0 }
   0x4   :  { %11 = vsyncpa [#allocation8], 0 }
   0x5   :  { %13 = vsyncpa [#allocation8 + $0x1], 0 }
   0x6   :  { %14 = vsyncpa [#allocation6], 0 }
   0x7   :  { %16 = vsyncpa [#allocation6 + $0x1], 0  ;;  %s869_s12 = smov 0   ;;  %s871_s13 = smov 0  }
   0x8   :  { %s873_s14 = smov 0   ;;  %s875_s15 = smov 0  }
   0x9   :  { %s877_s16 = smov 0   ;;  %s879_s17 = smov 0  }
   0xa LB: > { %1054 = sst [smem:[#allocation14_spill]] %s840_s16  ;;  %s900_s18 = sadd.s32 4294967295, %s844_s17   ;;  %s844_s17 = sphi %s879_s17, %s22_s17   ;;  %s840_s16 = sphi %s877_s16, %s1066_s16   ;;  %s836_s15 = sphi %s875_s15, %s1065_s15   ;;  %s832_s14 = sphi %s873_s14, %s1069_s14   ;;  %s828_s13 = sphi %s871_s13, %s1068_s13   ;;  %s824_s12 = sphi %s869_s12, %s1067_s12  }
   0xb   : > { %s563_s19 = sadd.s32 4294967294, %s844_s17   ;;  %s41_s20 = sadd.s32 1, %s840_s16 }
   0xc   : > { %s50_s21 = sadd.s32 1, %s832_s14  ;;  %p43_p0 = scmp.ge.s32.totalorder %s41_s20, 2 }
   0xd   : > { %p57_p1 = scmp.ne.s32.totalorder %s832_s14, %s828_s13  ;;  %p58_p2 = scmp.eq.s32.totalorder %s844_s17, 0 }
   0xe   : > { %p63_p3 = scmp.ne.s32.totalorder %s828_s13, %s824_s12  ;;  %s1071_s20 = smov (%p43_p0, %s41_s20), 0 }
   0xf   : > { %1055 = sst [smem:[#allocation15_spill]] %s1071_s20  ;;  %p912_p4 = por %p58_p2, %p57_p1 }
  0x10   : > { %p64_p5 = scmp.eq.s32.totalorder %s900_s18, 0  ;;  %s45_s23 = ssub.s32 %s840_s16, %s1071_s20 }
  0x11   : > { %p145_p6 = scmp.eq.s32.totalorder %s900_s18, 1  ;;  %p48_p7 = scmp.eq.s32.totalorder %s45_s23, 0 }
  0x12   : > { %p920_p8 = por %p64_p5, %p63_p3  ;;  %p151_p10 = scmp.eq.s32.totalorder %s563_s19, 1 }
  0x13   : > { %p924_p9 = por %p145_p6, %p57_p1  ;;  %p565_p12 = scmp.ge.s32.totalorder %s844_s17, 2 }
  0x14   : > { %s929_s26 = scalar_select %p48_p7, %s832_s14, %s50_s21  }
  0x15   : > { %p931_p11 = por %p151_p10, %p63_p3  ;;  %p606_p13 = scmp.lt.s32.totalorder %s844_s17, 2 }
  0x16   : > { %1059 = sst [smem:[#allocation16_spill]] %s929_s26  ;;  %s171_s28 = sand.u32 1, %s832_s14  }
  0x17   : > { %s566_s29 = sshll.u32 %s171_s28, 3  ;;  %s567_s30 = sshll.u32 %s840_s16, 3 }
  0x18   : > { %p941_p0 = pnand %p606_p13, %p912_p4  ;;  %s191_s5 = sand.u32 1, %s844_s17  }
  0x19   : > { %s1062_s1 = sld [smem:[#allocation17_spill]]  ;;  %s195_s10 = scalar_lea.vmem [#allocation7], %s566_s29 }
  0x1a   : > { %s204_s11 = sshll.u32 %s195_s10, 4  ;;  %s192_s19 = scalar_lea.sflag [#allocation8], %s191_s5  ;;  %s205_s11 = int_to_ptr.vmem [resolvable:$true] %s204_s11 }
  0x1b   : > { %p572_p1 = scmp.ge.s32.totalorder %s844_s17, 1  ;;  %p229_p2 = scmp.lt.s32.totalorder %s844_s17, 3 }
  0x1c   : > { %s180_s6 = scalar_lea.hbm %s1047_s0, %s567_s30  ;;  %s172_s10 = scalar_lea.sflag [#allocation5], %s171_s28 }
  0x1d   : > { %p953_p3 = pnand %p572_p1, %p229_p2  ;;  %s182_s7 = sshll.u32 %s180_s6, 4  ;;  %s183_s7 = int_to_ptr.hbm [resolvable:$true] %s182_s7 }
  0x1e   : > { %s215_s16 = scalar_lea.vmem [#allocation9], %s566_s29  ;;  %s970_s22 = sand.u32 (!%p953_p3), 1, %s828_s13  }
  0x1f   : > { %s200_s8 = scalar_lea.hbm %s1062_s1, %s567_s30  ;;  %s224_s26 = sshll.u32 %s215_s16, 4  ;;  %s225_s26 = int_to_ptr.vmem [resolvable:$true] %s224_s26 }
  0x20   : > { %s202_s9 = sshll.u32 %s200_s8, 4  ;;  %s175_s8 = scalar_lea.vmem [#allocation4], %s566_s29  ;;  %s203_s9 = int_to_ptr.hbm [resolvable:$true] %s202_s9 }
  0x21   : > { %598 = dma.hbm_to_vmem [thread:$0]  (!%p941_p0), %s203_s9, 128, %s205_s11, %s192_s19  }
  0x22   : > { %s184_s1 = sshll.u32 %s175_s8, 4  ;;  %s220_s11 = scalar_lea.hbm %s1049_s2, %s567_s30  ;;  %s185_s1 = int_to_ptr.vmem [resolvable:$true] %s184_s1 }
  0x23   : > { %595 = dma.hbm_to_vmem [thread:$0]  (!%p941_p0), %s183_s7, 128, %s185_s1, %s172_s10  }
  0x24   : > { %s222_s20 = sshll.u32 %s220_s11, 4  ;;  %233 = sbr.rel (%p953_p3) target bundleno = 660 (0x294), region = 32  ;;  %s223_s20 = int_to_ptr.hbm [resolvable:$true] %s222_s20 }
  0x25   : > { %601 = dma.hbm_to_vmem [thread:$0]  (!%p941_p0), %s223_s20, 128, %s225_s26, %s192_s19  }
  0x26   : > { %s973_s1 = sshll.u32 (!%p953_p3), %s970_s22, 3  ;;  %s236_s28 = scalar_lea.sflag (!%p953_p3), [#allocation5], %s970_s22 }
  0x27   : > { %s239_s30 = scalar_lea.vmem (!%p953_p3), [#allocation4], %s973_s1 }
  0x29   : > { %811 = dma.done.wait (%p920_p8), %s236_s28, 128  }
  0x2a   : > { %813 = vsyncadd (%p920_p8), %s236_s28, 4294967168  ;;  %s245_s16 = sand.u32 1, %s900_s18   ;;  %s249_s26 = scalar_lea.vmem [#allocation7], %s973_s1 }
  0x2b   : > { %s246_s20 = scalar_lea.sflag [#allocation8], %s245_s16 }
  0x2c   : > { %815 = dma.done.wait (%p920_p8), %s246_s20, 256  }
  0x2d   : > { %817 = vsyncadd (%p920_p8), %s246_s20, 4294967040  ;;  %vm300_vm0 = vcmask 261120   ;;  %v304_v0 = vld [vmem:[%s249_s26] sm:$0xff]  ;;  %v302_v1 = vld [vmem:[%s239_s30] sm:$0xff]  ;;  %vm297_vm1 = vcmask 7168   ;;  %v846_v3 = vmov -inf  }
  0x2e   : > { %577 = vmatpush.xpose.msk.msra.mxu0 %vm300_vm0, %v304_v0  ;;  %v303_v2 = vmul.f32 0.17677669, %v302_v1  ;;  %298 = vst.msk [vmem:[#allocation2] sm:$0xff] %vm297_vm1, %v846_v3  ;;  %vm334_vm2 = vcmask 64512   ;;  %v847_v6 = vmov 0   ;;  %v848_v7 = vmov 0.0  }
  0x2f   : > { %659 = vset.pattern.permute.xlu0 %v847_v6  ;;  %660 = vset.pattern.permute.xlu1 %v847_v6  ;;  %299 = vst.msk [vmem:[#allocation3] sm:$0xff] %vm297_vm1, %v848_v7  ;;  %s259_s18 = scalar_lea.vmem [#allocation9], %s973_s1  ;;  %s995_s24 = scalar_lea.vmem [#allocation10], %s973_s1 }
  0x30   : > { %661 = vset.pattern.permute.xlu2 %v847_v6  ;;  %v305_v12 = vld [vmem:[%s259_s18] sm:$0xff]  ;;  %301 = vst.msk [vmem:[%s995_s24] sm:$0xff] %vm300_vm0, %v848_v7  ;;  %s581_s29 = sshll.u32 %s836_s15, 3  ;;  %s431_s23 = sshll.u32 %s995_s24, 4  ;;  %s432_s23 = int_to_ptr.vmem [resolvable:$true] %s431_s23 }
  0x31   : > { %578 = vmatmul.msk.f32.vlgmr.msra.gmra.mxu0 %vm300_vm0, %v303_v2  ;;  %376 = vmatpush.msra.mxu1 %v305_v12  ;;  %s429_s21 = scalar_lea.hbm %s1050_s3, %s581_s29  ;;  %s418_s7 = scalar_lea.sflag [#allocation6], %s970_s22 }
  0x32   : > { %s433_s6 = sshll.u32 %s429_s21, 4  ;;  %s778_s9 = scalar_lea.hbm %s1050_s3, 16  ;;  %s434_s6 = int_to_ptr.hbm [resolvable:$true] %s433_s6 }
  0x33   : > { %s772_s8 = sshra.s32 %s434_s6, 4  ;;  %s773_s8 = int_to_ptr.hbm [resolvable:$true] %s772_s8 }
  0x34   : > { %s774_s10 = scalar_lea.hbm %s773_s8, 8  ;;  %p779_p7 = scmp.lt.s32.totalorder %s773_s8, %s1050_s3 }
  0x35   : > { %v333_v8 = vld [vmem:[#allocation2] sm:$0xff]  ;;  %p775_p4 = scmp.ne.s32.totalorder %s773_s8, %s774_s10  ;;  %p780_p8 = scmp.lt.s32.totalorder %s778_s9, %s774_s10 }
  0x36   : > { %v350_v20 = vld [vmem:[#allocation3] sm:$0xff] }
  0x37   : > { %v381_v29 = vld [vmem:[%s995_s24] sm:$0xff]  ;;  %p776_p5 = pnand %p775_p4, %p924_p9  ;;  %p781_p10 = por %p780_p8, %p779_p7 }
  0x39   : > { %p777_p6 = pneg %p776_p5 }
  0x3b   : > { %p782_p13 = pnand %p781_p10, %p777_p6 }
  0xae   : > { %v330_v4 = vpop.f32.mrf.mxu0 }
  0xaf   : > { %v335_v5 = vsel %vm334_vm2, %v330_v4, -inf }
  0xb0   : > { %336 = vmax.xlane.f32.xlu0 %v335_v5 }
 0x123   : > { %v337_v9 = vpop.xlane.xlu0 %336 }
 0x124   : > { %v338_v10 = vmax.f32 %v333_v8, %v337_v9 }
 0x126   : > { %v339_v11 = vsub.f32 %v333_v8, %v338_v10  ;;  %390 = vst.msk [vmem:[#allocation2] sm:$0xff] %vm297_vm1, %v338_v10  ;;  %344 = vperm.xlu0 %659, %v338_v10  }
 0x128   : > { %v340_v18 = vmul.f32 1.442695, %v339_v11 }
 0x198   : > { %v345_v13 = vpop.permute.xlu0 %344 }
 0x199   : > { %v347_v14 = vsub.f32 %v330_v4, %v345_v13 }
 0x19b   : > { %v348_v15 = vmul.f32 1.442695, %v347_v14 }
 0x19d   : > { %662 = vpow2.f32 %v348_v15 }
 0x19e   : > { %664 = vpow2.f32 %v340_v18 }
 0x1a3   : > { %v663_v16 = vpop.eup %662 }
 0x1a4   : > { %579 = vmatmul.msk.f32.vlgmr.msra.gmra.mxu1 %vm334_vm2, %v663_v16  ;;  %v352_v17 = vsel %vm334_vm2, %v663_v16, 0.0  ;;  %v665_v19 = vpop.eup %664 }
 0x1a5   : > { %353 = vadd.xlane.f32.xlu1 %v352_v17  ;;  %v351_v21 = vmul.f32 %v665_v19, %v350_v20 }
 0x1be   : > { %384 = vperm.xlu1 %660, %v665_v19  }
 0x218   : > { %v354_v22 = vpop.xlane.xlu1 %353 }
 0x219   : > { %v355_v23 = vadd.f32 %v354_v22, %v351_v21 }
 0x21b   : > { %357 = vst.msk [vmem:[#allocation3] sm:$0xff] %vm297_vm1, %v355_v23 }
 0x221   : > { %v378_v36 = vpop.f32.mrf.mxu1 }
 0x222   : > { %v394_v24 = vld [vmem:[#allocation3] sm:$0xff] }
 0x223   : > { %666 = vrcp.f32 %v394_v24  ;;  %v406_v28 = vand.u32 2147483648, %v394_v24  ;;  %v404_v31 = vand.u32 2147483647, %v394_v24  ;;  %vm400_vm4 = vweird.f32 %v394_v24 }
 0x225   : > { %v407_v35 = vor.u32 1.1754944e-38, %v406_v28  ;;  %vm405_vm6 = vcmp.eq.f32.partialorder %v404_v31, 8.507059e+37 }
 0x229   : > { %v667_v25 = vpop.eup %666 }
 0x22a   : > { %v396_v26 = vmul.f32 %v667_v25, %v394_v24  ;;  %vm401_vm3 = vweird.f32 %v667_v25 }
 0x22b   : > { %vm402_vm5 = vmor %vm400_vm4, %vm401_vm3 }
 0x22c   : > { %v397_v27 = vsub.f32 1.0, %v396_v26 }
 0x22e   : > { %v398_v30 = vmul.f32 %v667_v25, %v397_v27 }
 0x230   : > { %v385_v32 = vpop.permute.xlu1 %384  ;;  %v399_v33 = vadd.f32 %v667_v25, %v398_v30 }
 0x231   : > { %v387_v34 = vmul.f32 %v385_v32, %v381_v29 }
 0x232   : > { %v403_v37 = vsel %vm402_vm5, %v667_v25, %v399_v33 }
 0x233   : > { %v388_v38 = vadd.f32 %v387_v34, %v378_v36  ;;  %v408_v39 = vsel %vm405_vm6, %v407_v35, %v403_v37 }
 0x234   : > { %412 = vperm.xlu2 %661, %v408_v39  }
 0x235   : > { %389 = vst.msk [vmem:[%s995_s24] sm:$0xff] %vm300_vm0, %v388_v38 }
 0x23c   : > { %v409_v40 = vld [vmem:[%s995_s24] sm:$0xff] }
 0x28e   : > { %v413_v41 = vpop.permute.xlu2 %412 }
 0x28f   : > { %v415_v42 = vmul.f32 %v413_v41, %v409_v40 }
 0x291   : > { %416 = vst.msk [vmem:[%s995_s24] sm:$0xff] %vm300_vm0, %v415_v42 }
 0x292   : > { %785 = shalt.err (!%p782_p13)
}
 0x293   : > { %590 = dma.vmem_to_hbm [thread:$0]  (%p924_p9), %s432_s23, 128, %s434_s6, %s418_s7  }
 0x294 PF: > { %s445_s22 = sand.u32 1, %s824_s12   ;;  %p603_p0 = pnand %p565_p12, %p931_p11 }
 0x295   : > { %s446_s28 = scalar_lea.sflag [#allocation6], %s445_s22 }
 0x296   : > { %p604_p1 = pneg %p603_p0 }
 0x298   : > { %819 = dma.done.wait (%p604_p1), %s446_s28, 128  }
 0x299   : > { %821 = vsyncadd (%p604_p1), %s446_s28, 4294967168  ;;  %s22_s17 = sadd.s32 1, %s844_s17   ;;  %s1064_s30 = sld [smem:[#allocation16_spill]] }
 0x29a   : > { %p19_p2 = scmp.ge.s32.totalorder %s22_s17, 4   ;;  %s1065_s15 = sld [smem:[#allocation14_spill]] }
 0x29b   : > { %s1066_s16 = sld [smem:[#allocation15_spill]]  ;;  %s1067_s12 = smov %s828_s13 }
 0x29c   : > { %s1068_s13 = smov %s832_s14  ;;  %21 = sbr.rel (!%p19_p2) target bundleno = 10 (0xa), region = 109 }
 0x29f   : > { %s1069_s14 = smov %s1064_s30 }
 0x2a1   :  { %452 = vsyncpa [#allocation5], 1 }
 0x2a2   :  { %454 = vsyncpa [#allocation5 + $0x1], 1 }
 0x2a3   :  { %455 = vsyncpa [#allocation8], 1 }
 0x2a4   :  { %457 = vsyncpa [#allocation8 + $0x1], 1 }
 0x2a5   :  { %458 = vsyncpa [#allocation6], 1 }
 0x2a6   :  { %460 = vsyncpa [#allocation6 + $0x1], 1 }

</bundles_post_ra>
